<compile_context>
chip_gen: v6e
topology: v6e:2x2x1
jax: 0.10.0
libtpu: 0.0.40
codegen_flags: <defaults>
</compile_context>

<pallas_src>
import functools

import jax
import jax.numpy as jnp
from jax.experimental import pallas as pl
from jax.experimental.pallas import tpu as pltpu


def _round_up(n, m):
    return (n + m - 1) // m * m


def _vae_kernel(
    x_ref, eps_ref,
    w1_ref, b1_ref,
    wmv_ref, bmv_ref,
    wd_ref, bd_ref,
    wo_ref, bo_ref,
    out_ref, mlv_ref,
    *, h2,
):
    x = x_ref[...]
    eps = eps_ref[...]

    # Hoist bias loads (single (1, N) load each; broadcast happens in the f32 adds).
    b1 = b1_ref[...]
    bmv = bmv_ref[...]
    bd = bd_ref[...]
    bo = bo_ref[...]

    cd = w1_ref.dtype  # matmul compute dtype (weights pre-cast in the wrapper)

    # ---- Encoder ----
    h = jnp.dot(x.astype(cd), w1_ref[...], preferred_element_type=jnp.float32) + b1
    h = jnp.maximum(h, 0.0)  # relu; (dropout: identity in eval mode)

    # Fused z_mean | z_log_var matmul: one MXU pass, lane-dense (tb, 2*H2 padded) output.
    zmv = jnp.dot(h.astype(cd), wmv_ref[...], preferred_element_type=jnp.float32) + bmv
    z_mean = zmv[:, :h2]
    z_lvar = zmv[:, h2:2 * h2]

    # ---- Reparametrize (f32 element-wise: EUP exp + VPU) ----
    z = z_mean + jnp.exp(z_lvar * 0.5) * eps

    # ---- Decoder ----
    d = jnp.dot(z.astype(cd), wd_ref[...], preferred_element_type=jnp.float32) + bd
    d = jnp.maximum(d, 0.0)  # (dropout: identity in eval mode)
    o = jnp.dot(d.astype(cd), wo_ref[...], preferred_element_type=jnp.float32) + bo
    o = jnp.maximum(o, 0.0)

    out_ref[...] = o.astype(out_ref.dtype)
    mlv_ref[...] = zmv.astype(mlv_ref.dtype)


def vae_forward(x, eps, params, *, tb=None, matmul_dtype=jnp.float32):
    """x: (B, input_size), eps: (B, hidden_size_2). Returns (recon, z_mean, z_log_var).

    tb: batch tile (rows per grid step). matmul_dtype=jnp.bfloat16 is the compute-dtype
    lever for v6e/v7x; f32 keeps bit-tight numerics everywhere (element-wise math is f32
    in both cases).
    """
    B, D_in = x.shape
    H1 = params["w1"].shape[1]
    H2 = params["wm"].shape[1]

    LANE = 128
    D_p = _round_up(D_in, LANE)
    H1_p = _round_up(H1, LANE)
    M_p = _round_up(2 * H2, LANE)  # fused mean|logvar width, lane-dense

    # Batch tiling: tb rows per grid step, batch padded to a multiple of tb (>= mult of 8).
    B8 = _round_up(B, 8)
    if tb is None:
        tb = min(B8, 512)
    tb = _round_up(tb, 8)
    B_p = _round_up(B8, tb)
    grid = (B_p // tb,)

    f32 = jnp.float32

    def pad2(a, rows, cols):
        a = a.astype(f32)
        return jnp.pad(a, ((0, rows - a.shape[0]), (0, cols - a.shape[1])))

    # Zero-padded inputs / weights (zero rows & cols contribute exactly 0 to every dot;
    # zero-padded biases keep padded columns at relu(0) == 0).
    x_p = jnp.zeros((B_p, D_p), f32).at[:B, :D_in].set(x.astype(f32))
    eps_p = jnp.zeros((B_p, H2), f32).at[:B, :].set(eps.astype(f32))

    w1 = pad2(params["w1"], D_p, H1_p).astype(matmul_dtype)
    b1 = pad2(params["b1"], 1, H1_p)
    wmv = pad2(jnp.concatenate([params["wm"], params["wv"]], axis=1), H1_p, M_p).astype(matmul_dtype)
    bmv = pad2(jnp.concatenate([params["bm"], params["bv"]], axis=1), 1, M_p)
    wd = pad2(params["wd"], H2, H1_p).astype(matmul_dtype)
    bd = pad2(params["bd"], 1, H1_p)
    wo = pad2(params["wo"], H1_p, D_p).astype(matmul_dtype)
    bo = pad2(params["bo"], 1, D_p)

    # Batch-tiled activations/outputs vs. grid-resident weights.
    tile = lambda shape: pl.BlockSpec(shape, lambda i: (i, 0))
    resident = lambda shape: pl.BlockSpec(shape, lambda i: (0, 0))

    in_specs = [
        tile((tb, D_p)), tile((tb, H2)),
        resident(w1.shape), resident(b1.shape),
        resident(wmv.shape), resident(bmv.shape),
        resident(wd.shape), resident(bd.shape),
        resident(wo.shape), resident(bo.shape),
    ]
    out_specs = (tile((tb, D_p)), tile((tb, M_p)))
    out_shapes = (
        jax.ShapeDtypeStruct((B_p, D_p), f32),
        jax.ShapeDtypeStruct((B_p, M_p), f32),
    )

    # Right-size the VMEM request: resident weights + double-buffered activation tiles,
    # 2x headroom, clamped to [8 MiB, 64 MiB] (64 MiB == all of a v7x TC).
    wbytes = sum(int(a.size) * a.dtype.itemsize for a in (w1, b1, wmv, bmv, wd, bd, wo, bo))
    tbytes = 4 * tb * (D_p + H2 + D_p + M_p)
    vmem_limit = int(min(max(2 * (wbytes + 2 * tbytes) + (2 << 20), 8 << 20), 64 << 20))

    out, mlv = pl.pallas_call(
        functools.partial(_vae_kernel, h2=H2),
        out_shape=out_shapes,
        grid=grid,
        in_specs=in_specs,
        out_specs=out_specs,
        compiler_params=pltpu.CompilerParams(
            dimension_semantics=("parallel",),
            vmem_limit_bytes=vmem_limit,
        ),
    )(x_p, eps_p, w1, b1, wmv, bmv, wd, bd, wo, bo)

    recon = out[:B, :D_in]
    z_mean = mlv[:B, :H2]
    z_log_var = mlv[:B, H2:2 * H2]
    return recon, z_mean, z_log_var


def init_params(key, input_size, hidden_1, hidden_2):
    """PyTorch-style Linear init: U(-1/sqrt(fan_in), 1/sqrt(fan_in)), deterministic via key."""
    def linear(k, fan_in, fan_out):
        kw, kb = jax.random.split(k)
        bound = 1.0 / (fan_in ** 0.5)
        w = jax.random.uniform(kw, (fan_in, fan_out), jnp.float32, -bound, bound)
        b = jax.random.uniform(kb, (1, fan_out), jnp.float32, -bound, bound)
        return w, b

    k1, k2, k3, k4, k5 = jax.random.split(key, 5)
    w1, b1 = linear(k1, input_size, hidden_1)   # encoder.Dense
    wm, bm = linear(k2, hidden_1, hidden_2)     # encoder.z_mean
    wv, bv = linear(k3, hidden_1, hidden_2)     # encoder.z_log_var
    wd, bd = linear(k4, hidden_2, hidden_1)     # decoder.Dense
    wo, bo = linear(k5, hidden_1, input_size)   # decoder.out
    return dict(w1=w1, b1=b1, wm=wm, bm=bm, wv=wv, bv=bv, wd=wd, bd=bd, wo=wo, bo=bo)


if __name__ == "__main__":
    # Small config consistent with the module: input_size=32, hidden_size_1=32, hidden_size_2=16
    B, INPUT_SIZE, HIDDEN_1, HIDDEN_2 = 8, 32, 32, 16

    key = jax.random.PRNGKey(0)
    k_params, k_x, k_eps = jax.random.split(key, 3)

    params = init_params(k_params, INPUT_SIZE, HIDDEN_1, HIDDEN_2)
    x = jax.random.normal(k_x, (B, INPUT_SIZE), jnp.float32)
    eps = jax.random.normal(k_eps, (B, HIDDEN_2), jnp.float32)  # reparametrize noise

    recon, z_mean, z_log_var = vae_forward(x, eps, params)
    jax.block_until_ready((recon, z_mean, z_log_var))

    # Reference check in plain JAX (same math, eval-mode dropout)
    h = jnp.maximum(x @ params["w1"] + params["b1"], 0.0)
    zm = h @ params["wm"] + params["bm"]
    zv = h @ params["wv"] + params["bv"]
    z = zm + jnp.exp(zv / 2.0) * eps
    d = jnp.maximum(z @ params["wd"] + params["bd"], 0.0)
    ref = jnp.maximum(d @ params["wo"] + params["bo"], 0.0)

    assert recon.shape == (B, INPUT_SIZE)
    assert z_mean.shape == (B, HIDDEN_2) and z_log_var.shape == (B, HIDDEN_2)
    assert jnp.allclose(recon, ref, atol=1e-5, rtol=1e-5)
    assert jnp.allclose(z_mean, zm, atol=1e-5, rtol=1e-5)
    assert jnp.allclose(z_log_var, zv, atol=1e-5, rtol=1e-5)

    print("KERNEL_OK")
</pallas_src>

<mosaic_0001>
module attributes {stable_mosaic.version = 11 : i64} {
  func.func @_vae_kernel(%arg0: i32, %arg1: memref<8x128xf32, #tpu.memory_space<vmem>>, %arg2: memref<8x16xf32, #tpu.memory_space<vmem>>, %arg3: memref<128x128xf32, #tpu.memory_space<vmem>>, %arg4: memref<1x128xf32, #tpu.memory_space<vmem>>, %arg5: memref<128x128xf32, #tpu.memory_space<vmem>>, %arg6: memref<1x128xf32, #tpu.memory_space<vmem>>, %arg7: memref<16x128xf32, #tpu.memory_space<vmem>>, %arg8: memref<1x128xf32, #tpu.memory_space<vmem>>, %arg9: memref<128x128xf32, #tpu.memory_space<vmem>>, %arg10: memref<1x128xf32, #tpu.memory_space<vmem>>, %arg11: memref<8x128xf32, #tpu.memory_space<vmem>>, %arg12: memref<8x128xf32, #tpu.memory_space<vmem>>) attributes {dimension_semantics = [#tpu.dimension_semantics<parallel>], iteration_bounds = array<i64: 1>, scalar_prefetch = 0 : i64, scratch_operands = 0 : i64, tpu.core_type = #tpu.core_type<tc>, window_params = [{transform_indices = @transform_0, window_bounds = array<i64: 8, 128>}, {transform_indices = @transform_1, window_bounds = array<i64: 8, 16>}, {pipeline_mode = #tpu.pipeline_mode<synchronous>, transform_indices = @transform_2, window_bounds = array<i64: 128, 128>}, {pipeline_mode = #tpu.pipeline_mode<synchronous>, transform_indices = @transform_3, window_bounds = array<i64: 1, 128>}, {pipeline_mode = #tpu.pipeline_mode<synchronous>, transform_indices = @transform_4, window_bounds = array<i64: 128, 128>}, {pipeline_mode = #tpu.pipeline_mode<synchronous>, transform_indices = @transform_5, window_bounds = array<i64: 1, 128>}, {pipeline_mode = #tpu.pipeline_mode<synchronous>, transform_indices = @transform_6, window_bounds = array<i64: 16, 128>}, {pipeline_mode = #tpu.pipeline_mode<synchronous>, transform_indices = @transform_7, window_bounds = array<i64: 1, 128>}, {pipeline_mode = #tpu.pipeline_mode<synchronous>, transform_indices = @transform_8, window_bounds = array<i64: 128, 128>}, {pipeline_mode = #tpu.pipeline_mode<synchronous>, transform_indices = @transform_9, window_bounds = array<i64: 1, 128>}, {transform_indices = @transform_10, window_bounds = array<i64: 8, 128>}, {transform_indices = @transform_11, window_bounds = array<i64: 8, 128>}]} {
    %c0 = arith.constant 0 : index
    %c0_0 = arith.constant 0 : index
    %0 = vector.load %arg1[%c0, %c0_0] : memref<8x128xf32, #tpu.memory_space<vmem>>, vector<8x128xf32>
    %c0_1 = arith.constant 0 : index
    %c0_2 = arith.constant 0 : index
    %1 = vector.load %arg2[%c0_1, %c0_2] : memref<8x16xf32, #tpu.memory_space<vmem>>, vector<8x16xf32>
    %c0_3 = arith.constant 0 : index
    %c0_4 = arith.constant 0 : index
    %2 = vector.load %arg4[%c0_3, %c0_4] : memref<1x128xf32, #tpu.memory_space<vmem>>, vector<1x128xf32>
    %c0_5 = arith.constant 0 : index
    %c0_6 = arith.constant 0 : index
    %3 = vector.load %arg6[%c0_5, %c0_6] : memref<1x128xf32, #tpu.memory_space<vmem>>, vector<1x128xf32>
    %c0_7 = arith.constant 0 : index
    %c0_8 = arith.constant 0 : index
    %4 = vector.load %arg8[%c0_7, %c0_8] : memref<1x128xf32, #tpu.memory_space<vmem>>, vector<1x128xf32>
    %c0_9 = arith.constant 0 : index
    %c0_10 = arith.constant 0 : index
    %5 = vector.load %arg10[%c0_9, %c0_10] : memref<1x128xf32, #tpu.memory_space<vmem>>, vector<1x128xf32>
    %c0_11 = arith.constant 0 : index
    %c0_12 = arith.constant 0 : index
    %6 = vector.load %arg3[%c0_11, %c0_12] : memref<128x128xf32, #tpu.memory_space<vmem>>, vector<128x128xf32>
    %cst = arith.constant dense<0.000000e+00> : vector<8x128xf32>
    %7 = tpu.matmul %0, %6, %cst {dimension_numbers = #tpu.dot_dimension_numbers<[1], [0], [0], [1], [0, 0, 1, 1], [], []>} : vector<8x128xf32>, vector<128x128xf32>, vector<8x128xf32> -> vector<8x128xf32>
    %8 = vector.broadcast %2 : vector<1x128xf32> to vector<8x128xf32>
    %9 = arith.addf %7, %8 : vector<8x128xf32>
    %cst_13 = arith.constant 0.000000e+00 : f32
    %10 = vector.broadcast %cst_13 : f32 to vector<8x128xf32>
    %11 = arith.maximumf %9, %10 : vector<8x128xf32>
    %c0_14 = arith.constant 0 : index
    %c0_15 = arith.constant 0 : index
    %12 = vector.load %arg5[%c0_14, %c0_15] : memref<128x128xf32, #tpu.memory_space<vmem>>, vector<128x128xf32>
    %cst_16 = arith.constant dense<0.000000e+00> : vector<8x128xf32>
    %13 = tpu.matmul %11, %12, %cst_16 {dimension_numbers = #tpu.dot_dimension_numbers<[1], [0], [0], [1], [0, 0, 1, 1], [], []>} : vector<8x128xf32>, vector<128x128xf32>, vector<8x128xf32> -> vector<8x128xf32>
    %14 = vector.broadcast %3 : vector<1x128xf32> to vector<8x128xf32>
    %15 = arith.addf %13, %14 : vector<8x128xf32>
    %16 = vector.extract_strided_slice %15 {offsets = [0, 0], sizes = [8, 16], strides = [1, 1]} : vector<8x128xf32> to vector<8x16xf32>
    %17 = vector.extract_strided_slice %15 {offsets = [0, 16], sizes = [8, 16], strides = [1, 1]} : vector<8x128xf32> to vector<8x16xf32>
    %cst_17 = arith.constant 5.000000e-01 : f32
    %18 = vector.broadcast %cst_17 : f32 to vector<8x16xf32>
    %19 = arith.mulf %17, %18 : vector<8x16xf32>
    %20 = math.exp %19 : vector<8x16xf32>
    %21 = arith.mulf %20, %1 : vector<8x16xf32>
    %22 = arith.addf %16, %21 : vector<8x16xf32>
    %c0_18 = arith.constant 0 : index
    %c0_19 = arith.constant 0 : index
    %23 = vector.load %arg7[%c0_18, %c0_19] : memref<16x128xf32, #tpu.memory_space<vmem>>, vector<16x128xf32>
    %cst_20 = arith.constant dense<0.000000e+00> : vector<8x128xf32>
    %24 = tpu.matmul %22, %23, %cst_20 {dimension_numbers = #tpu.dot_dimension_numbers<[1], [0], [0], [1], [0, 0, 1, 1], [], []>} : vector<8x16xf32>, vector<16x128xf32>, vector<8x128xf32> -> vector<8x128xf32>
    %25 = vector.broadcast %4 : vector<1x128xf32> to vector<8x128xf32>
    %26 = arith.addf %24, %25 : vector<8x128xf32>
    %cst_21 = arith.constant 0.000000e+00 : f32
    %27 = vector.broadcast %cst_21 : f32 to vector<8x128xf32>
    %28 = arith.maximumf %26, %27 : vector<8x128xf32>
    %c0_22 = arith.constant 0 : index
    %c0_23 = arith.constant 0 : index
    %29 = vector.load %arg9[%c0_22, %c0_23] : memref<128x128xf32, #tpu.memory_space<vmem>>, vector<128x128xf32>
    %cst_24 = arith.constant dense<0.000000e+00> : vector<8x128xf32>
    %30 = tpu.matmul %28, %29, %cst_24 {dimension_numbers = #tpu.dot_dimension_numbers<[1], [0], [0], [1], [0, 0, 1, 1], [], []>} : vector<8x128xf32>, vector<128x128xf32>, vector<8x128xf32> -> vector<8x128xf32>
    %31 = vector.broadcast %5 : vector<1x128xf32> to vector<8x128xf32>
    %32 = arith.addf %30, %31 : vector<8x128xf32>
    %cst_25 = arith.constant 0.000000e+00 : f32
    %33 = vector.broadcast %cst_25 : f32 to vector<8x128xf32>
    %34 = arith.maximumf %32, %33 : vector<8x128xf32>
    %c0_26 = arith.constant 0 : index
    %c0_27 = arith.constant 0 : index
    %35 = vector.load %arg11[%c0_26, %c0_27] : memref<8x128xf32, #tpu.memory_space<vmem>>, vector<8x128xf32>
    tpu.vector_store %arg11[%c0_26, %c0_27], %34 {strides = array<i32>} : memref<8x128xf32, #tpu.memory_space<vmem>>, vector<8x128xf32>,
    %c0_28 = arith.constant 0 : index
    %c0_29 = arith.constant 0 : index
    %36 = vector.load %arg12[%c0_28, %c0_29] : memref<8x128xf32, #tpu.memory_space<vmem>>, vector<8x128xf32>
    tpu.vector_store %arg12[%c0_28, %c0_29], %15 {strides = array<i32>} : memref<8x128xf32, #tpu.memory_space<vmem>>, vector<8x128xf32>,
    return
  }
  func.func @transform_0(%arg0: i32) -> (i32, i32) {
    %c0_i32 = arith.constant 0 : i32
    %c0_i32_0 = arith.constant 0 : i32
    return %arg0, %c0_i32 : i32, i32
  }
  func.func @transform_1(%arg0: i32) -> (i32, i32) {
    %c0_i32 = arith.constant 0 : i32
    %c0_i32_0 = arith.constant 0 : i32
    return %arg0, %c0_i32 : i32, i32
  }
  func.func @transform_2(%arg0: i32) -> (i32, i32) {
    %c0_i32 = arith.constant 0 : i32
    %c0_i32_0 = arith.constant 0 : i32
    %c0_i32_1 = arith.constant 0 : i32
    return %c0_i32, %c0_i32_0 : i32, i32
  }
  func.func @transform_3(%arg0: i32) -> (i32, i32) {
    %c0_i32 = arith.constant 0 : i32
    %c0_i32_0 = arith.constant 0 : i32
    %c0_i32_1 = arith.constant 0 : i32
    return %c0_i32, %c0_i32_0 : i32, i32
  }
  func.func @transform_4(%arg0: i32) -> (i32, i32) {
    %c0_i32 = arith.constant 0 : i32
    %c0_i32_0 = arith.constant 0 : i32
    %c0_i32_1 = arith.constant 0 : i32
    return %c0_i32, %c0_i32_0 : i32, i32
  }
  func.func @transform_5(%arg0: i32) -> (i32, i32) {
    %c0_i32 = arith.constant 0 : i32
    %c0_i32_0 = arith.constant 0 : i32
    %c0_i32_1 = arith.constant 0 : i32
    return %c0_i32, %c0_i32_0 : i32, i32
  }
  func.func @transform_6(%arg0: i32) -> (i32, i32) {
    %c0_i32 = arith.constant 0 : i32
    %c0_i32_0 = arith.constant 0 : i32
    %c0_i32_1 = arith.constant 0 : i32
    return %c0_i32, %c0_i32_0 : i32, i32
  }
  func.func @transform_7(%arg0: i32) -> (i32, i32) {
    %c0_i32 = arith.constant 0 : i32
    %c0_i32_0 = arith.constant 0 : i32
    %c0_i32_1 = arith.constant 0 : i32
    return %c0_i32, %c0_i32_0 : i32, i32
  }
  func.func @transform_8(%arg0: i32) -> (i32, i32) {
    %c0_i32 = arith.constant 0 : i32
    %c0_i32_0 = arith.constant 0 : i32
    %c0_i32_1 = arith.constant 0 : i32
    return %c0_i32, %c0_i32_0 : i32, i32
  }
  func.func @transform_9(%arg0: i32) -> (i32, i32) {
    %c0_i32 = arith.constant 0 : i32
    %c0_i32_0 = arith.constant 0 : i32
    %c0_i32_1 = arith.constant 0 : i32
    return %c0_i32, %c0_i32_0 : i32, i32
  }
  func.func @transform_10(%arg0: i32) -> (i32, i32) {
    %c0_i32 = arith.constant 0 : i32
    %c0_i32_0 = arith.constant 0 : i32
    return %arg0, %c0_i32 : i32, i32
  }
  func.func @transform_11(%arg0: i32) -> (i32, i32) {
    %c0_i32 = arith.constant 0 : i32
    %c0_i32_0 = arith.constant 0 : i32
    return %arg0, %c0_i32 : i32, i32
  }
}

</mosaic_0001>

<bundles_post_ra>
// kernel: tpu_custom_call.1
= control target key start
LH: loop header
LB: loop body
LE: loop exit
PB: predicated region body
PF: predicated region fallthrough
CT: control target
= control target key end

     0   :  { %17 = vsyncpa [#allocation3], 0  ;;  %s1070_s0 = inlined_call_operand.hbm [shape: f32[8,128], index: 0, kind: input, shape index: {}]   ;;  %s1071_s1 = inlined_call_operand.hbm [shape: f32[8,16], index: 1, kind: input, shape index: {}]   ;;  %s1072_s2 = inlined_call_operand.hbm [shape: f32[128,128], index: 2, kind: input, shape index: {}]   ;;  %s1073_s3 = inlined_call_operand.vmem [shape: f32[1,128], index: 3, kind: input, shape index: {}]   ;;  %s1074_s4 = inlined_call_operand.hbm [shape: f32[128,128], index: 4, kind: input, shape index: {}]   ;;  %s1075_s5 = inlined_call_operand.vmem [shape: f32[1,128], index: 5, kind: input, shape index: {}]   ;;  %s1076_s6 = inlined_call_operand.hbm [shape: f32[16,128], index: 6, kind: input, shape index: {}]   ;;  %s1077_s7 = inlined_call_operand.vmem [shape: f32[1,128], index: 7, kind: input, shape index: {}]   ;;  %s1078_s8 = inlined_call_operand.hbm [shape: f32[128,128], index: 8, kind: input, shape index: {}]   ;;  %s1079_s9 = inlined_call_operand.vmem [shape: f32[1,128], index: 9, kind: input, shape index: {}]   ;;  %s1080_s10 = inlined_call_operand.hbm [shape: f32[8,128], index: 10, kind: output, shape index: {0}]   ;;  %s1081_s11 = inlined_call_operand.hbm [shape: f32[8,128], index: 11, kind: output, shape index: {1}]  }
   0x1   :  { %18 = vsyncpa [#allocation6], 0 }
   0x2   :  { %19 = vsyncpa [#allocation9], 0 }
   0x3   :  { %20 = vsyncpa [#allocation12], 0 }
   0x4   :  { %21 = vsyncpa [#allocation4], 0 }
   0x5   :  { %22 = vsyncpa [#allocation15], 0  ;;  %s890_s17 = smov [#allocation5]  }
   0x6   :  { %s39_s18 = sshll.u32 %s890_s17, 4  ;;  %s40_s18 = int_to_ptr.vmem [resolvable:$true] %s39_s18 }
   0x7   :  { %s726_s19 = scalar_lea.vmem %s40_s18, 128  ;;  %p731_p1 = scmp.lt.s32.totalorder %s40_s18, %s40_s18 }
   0x8   :  { %p727_p0 = scmp.ne.s32.totalorder %s40_s18, %s726_s19  ;;  %p732_p2 = scmp.lt.s32.totalorder %s726_s19, %s726_s19 }
   0xa   :  { %p733_p3 = por %p732_p2, %p731_p1 }
   0xc   :  { %p734_p4 = pnand %p733_p3, %p727_p0 }
   0xe   :  { %737 = shalt.err (!%p734_p4)
}
   0xf   :  { %42 = dma.hbm_to_vmem [thread:$0]  %s1071_s1, 128, %s40_s18, [#allocation6]  }
  0x10   :  { %s891_s22 = smov [#allocation8]   ;;  %s892_s24 = smov [#allocation2]  }
  0x11   :  { %s62_s23 = sshll.u32 %s891_s22, 4  ;;  %s29_s25 = sshll.u32 %s892_s24, 4  ;;  %s63_s23 = int_to_ptr.vmem [resolvable:$true] %s62_s23  ;;  %s30_s25 = int_to_ptr.vmem [resolvable:$true] %s29_s25 }
  0x12   :  { %s746_s26 = scalar_lea.vmem %s63_s23, 2048  ;;  %p751_p6 = scmp.lt.s32.totalorder %s63_s23, %s63_s23 }
  0x13   :  { %p747_p5 = scmp.ne.s32.totalorder %s63_s23, %s746_s26  ;;  %p752_p7 = scmp.lt.s32.totalorder %s746_s26, %s746_s26 }
  0x15   :  { %p753_p8 = por %p752_p7, %p751_p6 }
  0x17   :  { %p754_p9 = pnand %p753_p8, %p747_p5 }
  0x19   :  { %757 = shalt.err (!%p754_p9)
}
  0x1a   :  { %s893_s27 = smov 128   ;;  %s894_s28 = smov 8  }
  0x1b   :  { %68 = dma.hbm_to_vmem [thread:$0]  %s1074_s4, 2048, %s63_s23, [#allocation9], %s893_s27, %s893_s27, %s894_s28  }
  0x1c   :  { %s766_s1 = scalar_lea.vmem %s30_s25, 128  ;;  %p771_p11 = scmp.lt.s32.totalorder %s30_s25, %s30_s25 }
  0x1d   :  { %p767_p10 = scmp.ne.s32.totalorder %s30_s25, %s766_s1  ;;  %p772_p12 = scmp.lt.s32.totalorder %s766_s1, %s766_s1 }
  0x1f   :  { %p773_p13 = por %p772_p12, %p771_p11 }
  0x21   :  { %p774_p0 = pnand %p773_p13, %p767_p10 }
  0x23   :  { %777 = shalt.err (!%p774_p0)
}
  0x24   :  { %32 = dma.hbm_to_vmem [thread:$0]  %s1070_s0, 128, %s30_s25, [#allocation3]  }
  0x25   :  { %s895_s14 = smov [#allocation7]   ;;  %s896_s16 = smov [#allocation10]  }
  0x26   :  { %s48_s15 = sshll.u32 %s895_s14, 4  ;;  %s76_s17 = sshll.u32 %s896_s16, 4  ;;  %s49_s15 = int_to_ptr.vmem [resolvable:$true] %s48_s15  ;;  %s77_s17 = int_to_ptr.vmem [resolvable:$true] %s76_s17 }
  0x27   :  { %s786_s18 = scalar_lea.vmem %s49_s15, 2048  ;;  %p791_p2 = scmp.lt.s32.totalorder %s49_s15, %s49_s15 }
  0x28   :  { %p787_p1 = scmp.ne.s32.totalorder %s49_s15, %s786_s18  ;;  %p792_p3 = scmp.lt.s32.totalorder %s786_s18, %s786_s18 }
  0x2a   :  { %p793_p4 = por %p792_p3, %p791_p2 }
  0x2c   :  { %p794_p5 = pnand %p793_p4, %p787_p1 }
  0x2e   :  { %797 = shalt.err (!%p794_p5)
}
  0x2f   :  { %54 = dma.hbm_to_vmem [thread:$0]  %s1072_s2, 2048, %s49_s15, [#allocation6], %s893_s27, %s893_s27, %s894_s28  }
  0x30   :  { %s806_s0 = scalar_lea.vmem %s77_s17, 256  ;;  %p811_p7 = scmp.lt.s32.totalorder %s77_s17, %s77_s17 }
  0x31   :  { %p807_p6 = scmp.ne.s32.totalorder %s77_s17, %s806_s0  ;;  %p812_p8 = scmp.lt.s32.totalorder %s806_s0, %s806_s0 }
  0x33   :  { %p813_p9 = por %p812_p8, %p811_p7 }
  0x35   :  { %p814_p10 = pnand %p813_p9, %p807_p6 }
  0x37   :  { %817 = shalt.err (!%p814_p10)
}
  0x38   :  { %82 = dma.hbm_to_vmem [thread:$0]  %s1076_s6, 256, %s77_s17, [#allocation9], %s893_s27, %s893_s27, %s894_s28  }
  0x39   :  { %s897_s22 = smov [#allocation11]  }
  0x3a   :  { %s90_s23 = sshll.u32 %s897_s22, 4  ;;  %s91_s23 = int_to_ptr.vmem [resolvable:$true] %s90_s23 }
  0x3b   :  { %s826_s24 = scalar_lea.vmem %s91_s23, 2048  ;;  %p831_p12 = scmp.lt.s32.totalorder %s91_s23, %s91_s23 }
  0x3c   :  { %p827_p11 = scmp.ne.s32.totalorder %s91_s23, %s826_s24  ;;  %p832_p13 = scmp.lt.s32.totalorder %s826_s24, %s826_s24 }
  0x3e   :  { %p833_p0 = por %p832_p13, %p831_p12 }
  0x40   :  { %p834_p1 = pnand %p833_p0, %p827_p11 }
  0x42   :  { %837 = shalt.err (!%p834_p1)
}
  0x43   :  { %96 = dma.hbm_to_vmem [thread:$0]  %s1078_s8, 2048, %s91_s23, [#allocation12], %s893_s27, %s893_s27, %s894_s28  }
  0x44   :  { %878 = dma.done.wait [#allocation3], 128  }
  0x45   :  { %879 = vsyncadd [#allocation3], 4294967168 }
  0x46   :  { %880 = dma.done.wait [#allocation6], 2176  }
  0x47   :  { %881 = vsyncadd [#allocation6], 4294965120 }
  0x48   :  { %882 = dma.done.wait [#allocation9], 2304  }
  0x49   :  { %883 = vsyncadd [#allocation9], 4294964992 }
  0x4a   :  { %884 = dma.done.wait [#allocation12], 2048  }
  0x4b   :  { %885 = vsyncadd [#allocation12], 4294965248  ;;  %v898_v0 = vmov 0.0   ;;  %vm899_vm0 = vmmov 0   ;;  %v138_v1 = vld [vmem:[#allocation7 + $0x78] sm:$0xff]  ;;  %v137_v2 = vld [vmem:[#allocation7 + $0x70] sm:$0xff] }
  0x4c   :  { %590 = vmatprep.subr.mxu0 %v898_v0  ;;  %622 = vmatprep.mubr.msk.f32.mxu0 %vm899_vm0, %v898_v0  ;;  %v136_v3 = vld [vmem:[#allocation7 + $0x68] sm:$0xff]  ;;  %v135_v4 = vld [vmem:[#allocation7 + $0x60] sm:$0xff]  ;;  %v231_v5 = vld [vmem:[#allocation8 + $0x78] sm:$0xff]  ;;  %s900_s6 = smov 16   ;;  %vm329_vm1 = vcmask 130048   ;;  %s902_s30 = smov [#allocation14]  }
  0x4d   :  { %625 = vmatprep.subr.mxu1 %v898_v0  ;;  %657 = vmatprep.mubr.msk.f32.mxu1 %vm899_vm0, %v898_v0  ;;  %v134_v6 = vld [vmem:[#allocation7 + $0x58] sm:$0xff]  ;;  %v230_v7 = vld [vmem:[#allocation8 + $0x70] sm:$0xff]  ;;  %v229_v8 = vld [vmem:[#allocation8 + $0x68] sm:$0xff]  ;;  %s515_s1 = sshll.u32 %s902_s30, 4  ;;  %s516_s1 = int_to_ptr.vmem [resolvable:$true] %s515_s1 }
  0x4e   :  { %591 = vmatpush3.msra.mxu0 %v138_v1  ;;  %626 = vmatpush3.msra.mxu1 %v231_v5  ;;  %v133_v9 = vld [vmem:[#allocation7 + $0x50] sm:$0xff]  ;;  %v228_v10 = vld [vmem:[#allocation8 + $0x60] sm:$0xff]  ;;  %v132_v11 = vld [vmem:[#allocation7 + $0x48] sm:$0xff]  ;;  %s838_s12 = scalar_lea.vmem %s516_s1, 128  ;;  %p843_p3 = scmp.lt.s32.totalorder %s516_s1, %s516_s1 }
  0x4f   :  { %592 = vmatprep.subr.mxu0 %v898_v0  ;;  %627 = vmatprep.subr.mxu1 %v898_v0  ;;  %v227_v12 = vld [vmem:[#allocation8 + $0x58] sm:$0xff]  ;;  %v131_v13 = vld [vmem:[#allocation7 + $0x40] sm:$0xff]  ;;  %v226_v14 = vld [vmem:[#allocation8 + $0x50] sm:$0xff]  ;;  %p839_p2 = scmp.ne.s32.totalorder %s516_s1, %s838_s12  ;;  %p844_p4 = scmp.lt.s32.totalorder %s838_s12, %s838_s12 }
  0x50   :  { %593 = vmatpush3.msra.mxu0 %v137_v2  ;;  %628 = vmatpush3.msra.mxu1 %v230_v7  ;;  %v130_v15 = vld [vmem:[#allocation7 + $0x38] sm:$0xff]  ;;  %v225_v16 = vld [vmem:[#allocation8 + $0x48] sm:$0xff]  ;;  %v129_v17 = vld [vmem:[#allocation7 + $0x30] sm:$0xff] }
  0x51   :  { %594 = vmatprep.subr.mxu0 %v898_v0  ;;  %629 = vmatprep.subr.mxu1 %v898_v0  ;;  %v224_v18 = vld [vmem:[#allocation8 + $0x40] sm:$0xff]  ;;  %v128_v19 = vld [vmem:[#allocation7 + $0x28] sm:$0xff]  ;;  %v223_v20 = vld [vmem:[#allocation8 + $0x38] sm:$0xff]  ;;  %p845_p5 = por %p844_p4, %p843_p3 }
  0x52   :  { %595 = vmatpush3.msra.mxu0 %v136_v3  ;;  %630 = vmatpush3.msra.mxu1 %v229_v8  ;;  %v127_v21 = vld [vmem:[#allocation7 + $0x20] sm:$0xff]  ;;  %v222_v22 = vld [vmem:[#allocation8 + $0x30] sm:$0xff]  ;;  %v126_v23 = vld [vmem:[#allocation7 + $0x18] sm:$0xff] }
  0x53   :  { %596 = vmatprep.subr.mxu0 %v898_v0  ;;  %631 = vmatprep.subr.mxu1 %v898_v0  ;;  %v221_v24 = vld [vmem:[#allocation8 + $0x28] sm:$0xff]  ;;  %v125_v25 = vld [vmem:[#allocation7 + $0x10] sm:$0xff]  ;;  %v220_v26 = vld [vmem:[#allocation8 + $0x20] sm:$0xff]  ;;  %p846_p6 = pnand %p845_p5, %p839_p2 }
  0x54   :  { %597 = vmatpush3.msra.mxu0 %v135_v4  ;;  %632 = vmatpush3.msra.mxu1 %v228_v10  ;;  %v124_v27 = vld [vmem:[#allocation7 + $0x8] sm:$0xff]  ;;  %v219_v28 = vld [vmem:[#allocation8 + $0x18] sm:$0xff]  ;;  %v123_v29 = vld [vmem:[#allocation7] sm:$0xff] }
  0x55   :  { %598 = vmatprep.subr.mxu0 %v898_v0  ;;  %633 = vmatprep.subr.mxu1 %v898_v0  ;;  %v117_v30 = vld [vmem:[#allocation2] sm:$0xff]  ;;  %v217_v32 = vld [vmem:[#allocation8 + $0x8] sm:$0xff]  ;;  %v216_v33 = vld [vmem:[#allocation8] sm:$0xff] }
  0x56   :  { %599 = vmatpush3.msra.mxu0 %v134_v6  ;;  %634 = vmatpush3.msra.mxu1 %v227_v12  ;;  %v218_v31 = vld [vmem:[#allocation8 + $0x10] sm:$0xff]  ;;  %v118_v34 = vld [vmem:[#allocation5] sm:$0xff]  ;;  %v322_v40 = vld [vmem:[#allocation10 + $0x8] sm:$0xff] }
  0x57   :  { %600 = vmatprep.subr.mxu0 %v898_v0  ;;  %635 = vmatprep.subr.mxu1 %v898_v0  ;;  %v531_v35 = vld [vmem:[%s1073_s3] ss:$0 sm:$0xff]  ;;  %v321_v47 = vld [vmem:[#allocation10] sm:$0xff]  ;;  %v419_v48 = vld [vmem:[#allocation11 + $0x78] sm:$0xff]  ;;  %s901_s3 = smov 112  }
  0x58   :  { %601 = vmatpush3.msra.mxu0 %v133_v9  ;;  %636 = vmatpush3.msra.mxu1 %v226_v14  ;;  %v532_v41 = vld [vmem:[%s1075_s5] ss:$0 sm:$0xff]  ;;  %v418_v49 = vld [vmem:[#allocation11 + $0x70] sm:$0xff]  ;;  %v417_v50 = vld [vmem:[#allocation11 + $0x68] sm:$0xff] }
  0x59   :  { %602 = vmatprep.subr.mxu0 %v898_v0  ;;  %637 = vmatprep.subr.mxu1 %v898_v0  ;;  %v416_v51 = vld [vmem:[#allocation11 + $0x60] sm:$0xff]  ;;  %v415_v53 = vld [vmem:[#allocation11 + $0x58] sm:$0xff]  ;;  %v414_v55 = vld [vmem:[#allocation11 + $0x50] sm:$0xff] }
  0x5a   :  { %603 = vmatpush3.msra.mxu0 %v132_v11  ;;  %638 = vmatpush3.msra.mxu1 %v225_v16  ;;  %v413_v57 = vld [vmem:[#allocation11 + $0x48] sm:$0xff]  ;;  %v412_v58 = vld [vmem:[#allocation11 + $0x40] sm:$0xff]  ;;  %v411_v59 = vld [vmem:[#allocation11 + $0x38] sm:$0xff] }
  0x5b   :  { %604 = vmatprep.subr.mxu0 %v898_v0  ;;  %639 = vmatprep.subr.mxu1 %v898_v0  ;;  %v410_v60 = vld [vmem:[#allocation11 + $0x30] sm:$0xff]  ;;  %v409_v61 = vld [vmem:[#allocation11 + $0x28] sm:$0xff]  ;;  %v408_v62 = vld [vmem:[#allocation11 + $0x20] sm:$0xff] }
  0x5c   :  { %605 = vmatpush3.msra.mxu0 %v131_v13  ;;  %640 = vmatpush3.msra.mxu1 %v224_v18  ;;  %v407_v63 = vld [vmem:[#allocation11 + $0x18] sm:$0xff]  ;;  %v406_v3 = vld [vmem:[#allocation11 + $0x10] sm:$0xff]  ;;  %v405_v4 = vld [vmem:[#allocation11 + $0x8] sm:$0xff] }
  0x5d   :  { %606 = vmatprep.subr.mxu0 %v898_v0  ;;  %641 = vmatprep.subr.mxu1 %v898_v0  ;;  %v404_v5 = vld [vmem:[#allocation11] sm:$0xff] }
  0x5e   :  { %607 = vmatpush3.msra.mxu0 %v130_v15  ;;  %642 = vmatpush3.msra.mxu1 %v223_v20  ;;  %v533_v6 = vld [vmem:[%s1077_s7] ss:$0 sm:$0xff] }
  0x5f   :  { %608 = vmatprep.subr.mxu0 %v898_v0  ;;  %643 = vmatprep.subr.mxu1 %v898_v0 }
  0x60   :  { %609 = vmatpush3.msra.mxu0 %v129_v17  ;;  %644 = vmatpush3.msra.mxu1 %v222_v22 }
  0x61   :  { %610 = vmatprep.subr.mxu0 %v898_v0  ;;  %645 = vmatprep.subr.mxu1 %v898_v0 }
  0x62   :  { %611 = vmatpush3.msra.mxu0 %v128_v19  ;;  %646 = vmatpush3.msra.mxu1 %v221_v24 }
  0x63   :  { %612 = vmatprep.subr.mxu0 %v898_v0  ;;  %647 = vmatprep.subr.mxu1 %v898_v0 }
  0x64   :  { %613 = vmatpush3.msra.mxu0 %v127_v21  ;;  %648 = vmatpush3.msra.mxu1 %v220_v26 }
  0x65   :  { %614 = vmatprep.subr.mxu0 %v898_v0  ;;  %649 = vmatprep.subr.mxu1 %v898_v0 }
  0x66   :  { %615 = vmatpush3.msra.mxu0 %v126_v23  ;;  %650 = vmatpush3.msra.mxu1 %v219_v28 }
  0x67   :  { %616 = vmatprep.subr.mxu0 %v898_v0  ;;  %651 = vmatprep.subr.mxu1 %v898_v0 }
  0x68   :  { %617 = vmatpush3.msra.mxu0 %v125_v25  ;;  %652 = vmatpush3.msra.mxu1 %v218_v31 }
  0x69   :  { %618 = vmatprep.subr.mxu0 %v898_v0  ;;  %653 = vmatprep.subr.mxu1 %v898_v0 }
  0x6a   :  { %619 = vmatpush3.msra.mxu0 %v124_v27  ;;  %654 = vmatpush3.msra.mxu1 %v217_v32 }
  0x6b   :  { %620 = vmatprep.subr.mxu0 %v898_v0  ;;  %655 = vmatprep.subr.mxu1 %v898_v0 }
  0x6c   :  { %621 = vmatpush3.msra.mxu0 %v123_v29  ;;  %656 = vmatpush3.msra.mxu1 %v216_v33 }
  0x6d   :  { %623 = vmatmul.mubr.f32.vlgmr.msra.gmra.mxu0 %v117_v30  ;;  %660 = vmatprep.subr.mxu0 %v898_v0 }
  0x6e   :  { %664 = vmatprep.mubr.msk.f32.mxu0 %vm899_vm0, %v898_v0  ;;  %667 = vmatprep.subr.mxu1 %v898_v0 }
  0x6f   :  { %312 = vrot.lane.b32.xlu0 %v118_v34, %s900_s6  ;;  %661 = vmatpush3.msra.mxu0 %v322_v40 }
  0x70   :  { %662 = vmatprep.subr.mxu0 %v898_v0 }
  0x71   :  { %663 = vmatpush3.msra.mxu0 %v321_v47 }
  0xe1   :  { %v313_v52 = vpop.permute.xlu0 %312 }
 0x12d   :  { %v211_v36 = vpop.f32.mrf.mxu0 }
 0x12e   :  { %v212_v37 = vadd.f32 %v531_v35, %v211_v36 }
 0x12f   :  { %v624_v38 = vpop.f32.mrf.mxu0 }
 0x130   :  { %v215_v39 = vmax.f32 %v212_v37, 0.0 }
 0x132   :  { %658 = vmatmul.mubr.f32.vlgmr.msra.gmra.mxu1 %v215_v39 }
 0x133   :  { %699 = vmatprep.mubr.msk.f32.mxu1 %vm899_vm0, %v898_v0  ;;  %668 = vmatpush3.msra.mxu1 %v419_v48 }
 0x134   :  { %669 = vmatprep.subr.mxu1 %v898_v0 }
 0x135   :  { %670 = vmatpush3.msra.mxu1 %v418_v49 }
 0x136   :  { %671 = vmatprep.subr.mxu1 %v898_v0 }
 0x137   :  { %672 = vmatpush3.msra.mxu1 %v417_v50 }
 0x138   :  { %673 = vmatprep.subr.mxu1 %v898_v0 }
 0x139   :  { %674 = vmatpush3.msra.mxu1 %v416_v51 }
 0x13a   :  { %675 = vmatprep.subr.mxu1 %v898_v0 }
 0x13b   :  { %676 = vmatpush3.msra.mxu1 %v415_v53 }
 0x13c   :  { %677 = vmatprep.subr.mxu1 %v898_v0 }
 0x13d   :  { %678 = vmatpush3.msra.mxu1 %v414_v55 }
 0x13e   :  { %679 = vmatprep.subr.mxu1 %v898_v0 }
 0x13f   :  { %680 = vmatpush3.msra.mxu1 %v413_v57 }
 0x140   :  { %681 = vmatprep.subr.mxu1 %v898_v0 }
 0x141   :  { %682 = vmatpush3.msra.mxu1 %v412_v58 }
 0x142   :  { %683 = vmatprep.subr.mxu1 %v898_v0 }
 0x143   :  { %684 = vmatpush3.msra.mxu1 %v411_v59 }
 0x144   :  { %685 = vmatprep.subr.mxu1 %v898_v0 }
 0x145   :  { %686 = vmatpush3.msra.mxu1 %v410_v60 }
 0x146   :  { %687 = vmatprep.subr.mxu1 %v898_v0 }
 0x147   :  { %688 = vmatpush3.msra.mxu1 %v409_v61 }
 0x148   :  { %689 = vmatprep.subr.mxu1 %v898_v0 }
 0x149   :  { %690 = vmatpush3.msra.mxu1 %v408_v62 }
 0x14a   :  { %691 = vmatprep.subr.mxu1 %v898_v0 }
 0x14b   :  { %692 = vmatpush3.msra.mxu1 %v407_v63 }
 0x14c   :  { %693 = vmatprep.subr.mxu1 %v898_v0 }
 0x14d   :  { %694 = vmatpush3.msra.mxu1 %v406_v3 }
 0x14e   :  { %695 = vmatprep.subr.mxu1 %v898_v0 }
 0x14f   :  { %696 = vmatpush3.msra.mxu1 %v405_v4 }
 0x150   :  { %697 = vmatprep.subr.mxu1 %v898_v0 }
 0x151   :  { %698 = vmatpush3.msra.mxu1 %v404_v5 }
 0x1f2   :  { %v304_v42 = vpop.f32.mrf.mxu1 }
 0x1f3   :  { %v305_v43 = vadd.f32 %v532_v41, %v304_v42 }
 0x1f4   :  { %v659_v44 = vpop.f32.mrf.mxu1 }
 0x1f5   :  { %v308_v45 = vmul.f32 0.5, %v305_v43  ;;  %498 = vst [vmem:[#allocation14] sm:$0xff] %v305_v43 }
 0x1f7   :  { %v309_v46 = vmul.f32 1.442695, %v308_v45 }
 0x1f9   :  { %716 = vpow2.f32 %v309_v46 }
 0x206   :  { %v717_v54 = vpop.eup %716 }
 0x207   :  { %v315_v56 = vmul.f32 %v717_v54, %v313_v52 }
 0x209   :  { %317 = vrot.lane.b32.xlu0 %v315_v56, %s901_s3 }
 0x27b   :  { %v318_v1 = vpop.permute.xlu0 %317 }
 0x27c   :  { %v320_v2 = vadd.f32 %v318_v1, %v305_v43 }
 0x27e   :  { %665 = vmatmul.mubr.msk.f32.vlgmr.msra.gmra.mxu0 %vm329_vm1, %v320_v2 }
 0x33e   :  { %v399_v7 = vpop.f32.mrf.mxu0 }
 0x33f   :  { %v400_v8 = vadd.f32 %v533_v6, %v399_v7 }
 0x340   :  { %v666_v9 = vpop.f32.mrf.mxu0 }
 0x341   :  { %v403_v10 = vmax.f32 %v400_v8, 0.0 }
 0x343   :  { %700 = vmatmul.mubr.f32.vlgmr.msra.gmra.mxu1 %v403_v10 }
 0x344   :  { %849 = shalt.err (!%p846_p6)
}
 0x345   :  { %518 = dma.vmem_to_hbm [thread:$0]  %s516_s1, 128, %s1081_s11, [#allocation15]   ;;  %v535_v0 = vld [vmem:[%s1079_s9] ss:$0 sm:$0xff] }
 0x346   :  { %s903_s16 = smov [#allocation13]  }
 0x347   :  { %s505_s17 = sshll.u32 %s903_s16, 4  ;;  %s506_s17 = int_to_ptr.vmem [resolvable:$true] %s505_s17 }
 0x348   :  { %s858_s18 = scalar_lea.vmem %s506_s17, 128  ;;  %p863_p8 = scmp.lt.s32.totalorder %s506_s17, %s506_s17 }
 0x349   :  { %p859_p7 = scmp.ne.s32.totalorder %s506_s17, %s858_s18  ;;  %p864_p9 = scmp.lt.s32.totalorder %s858_s18, %s858_s18 }
 0x34b   :  { %p865_p10 = por %p864_p9, %p863_p8 }
 0x34d   :  { %p866_p11 = pnand %p865_p10, %p859_p7 }
 0x403   :  { %v492_v11 = vpop.f32.mrf.mxu1 }
 0x404   :  { %v493_v12 = vadd.f32 %v535_v0, %v492_v11 }
 0x405   :  { %v701_v13 = vpop.f32.mrf.mxu1 }
 0x406   :  { %v496_v14 = vmax.f32 %v493_v12, 0.0 }
 0x408   :  { %497 = vst [vmem:[#allocation13] sm:$0xff] %v496_v14 }
 0x409   :  { %869 = shalt.err (!%p866_p11)
}
 0x40a   :  { %508 = dma.vmem_to_hbm [thread:$0]  %s506_s17, 128, %s1080_s10, [#allocation4]  }
 0x40b   :  { %886 = dma.done.wait [#allocation4], 128  }
 0x40c   :  { %887 = vsyncadd [#allocation4], 4294967168 }
 0x40d   :  { %888 = dma.done.wait [#allocation15], 128  }
 0x40e   :  { %889 = vsyncadd [#allocation15], 4294967168 }
 0x40f   :  { %525 = vsyncpa [#allocation3], 1 }
 0x410   :  { %526 = vsyncpa [#allocation6], 1 }
 0x411   :  { %527 = vsyncpa [#allocation9], 1 }
 0x412   :  { %528 = vsyncpa [#allocation12], 1 }
 0x413   :  { %529 = vsyncpa [#allocation4], 1 }
 0x414   :  { %530 = vsyncpa [#allocation15], 1 }

</bundles_post_ra>
